<compile_context>
chip_gen: v6e
topology: v6e:2x2x1
jax: 0.10.0
libtpu: 0.0.40
codegen_flags: <defaults>
</compile_context>

<pallas_src>
import jax
import jax.numpy as jnp
import numpy as np
from jax.experimental import pallas as pl
from jax.experimental.pallas import tpu as pltpu

# ----------------------------- configuration --------------------------------
CAT_FEATURE_SIZES = [4, 6, 8]
N_CONT_FEATURES = 5
EMBEDDING_DIM = 16
HIDDEN_DIMS = [32, 32]
DROPOUT = [0.5, 0.5]            # identity in eval mode
USE_CONT_FOR_FM = True
BATCH = 8

N_CAT = len(CAT_FEATURE_SIZES)
N_FIELDS = N_CAT + (N_CONT_FEATURES if USE_CONT_FOR_FM else 0)
DEEP_IN = N_FIELDS * EMBEDDING_DIM                 # 128 (only used host-side)
H1, H2 = HIDDEN_DIMS
N_RAW = N_CAT + N_CONT_FEATURES                    # 8 raw features per row
X_DIM = sum(CAT_FEATURE_SIZES) + 2 * N_CONT_FEATURES   # 18 + 5 + 5 = 28
OUT_COLS = H1 + EMBEDDING_DIM + 1                  # 32 + 16 + 1 = 49
BN_EPS = 1e-5

assert USE_CONT_FOR_FM, "kernel assumes deep input = N_FIELDS * EMBEDDING_DIM"


# ------------------------------- Pallas kernel -------------------------------
def deepfm_kernel(feats_ref, wf_ref, b1_ref, w2_ref, b2_ref, w3_ref, b3_ref,
                  out_ref):
    # feats_ref: (T, 8)        f32  [cat0, cat1, cat2, cont0..cont4]
    # wf_ref:    (28, 49)      f32  fused [E@W1' | field-sum block | precomp col]
    # b1_ref:    (1, H1)       f32  BN-folded bias of layer 1
    # w2_ref:    (H1, H2)      f32  BN-folded W2
    # b2_ref:    (1, H2)       f32  BN-folded bias of layer 2
    # w3_ref:    (1, H2)       f32  W3^T (row vector)
    # b3_ref:    (1, 1)        f32  b3 + FM global bias (SMEM scalar)
    # out_ref:   (T, 1)        f32  positive-class probability
    feats = feats_ref[...]                                      # (T, 8)
    cont = feats[:, N_CAT:]                                     # (T, 5)

    # Fused 28-wide feature row: one-hot cat fields | cont | cont^2.
    parts = []
    for f, size in enumerate(CAT_FEATURE_SIZES):                # static 3-iter loop
        iota = jax.lax.broadcasted_iota(jnp.int32, (1, size), 1).astype(jnp.float32)
        parts.append(jnp.where(feats[:, f:f + 1] == iota, 1.0, 0.0))
    parts.append(cont)
    parts.append(cont * cont)
    x = jnp.concatenate(parts, axis=1)                          # (T, 28)

    # Single MXU pass: layer-1 pre-act | FM per-dim field sums | precomp.
    hs = jnp.dot(x, wf_ref[...], preferred_element_type=jnp.float32)  # (T, 49)
    h = jnp.maximum(hs[:, :H1] + b1_ref[...], 0.0)              # (T, 32)
    s = hs[:, H1:H1 + EMBEDDING_DIM]                            # (T, 16)
    precomp = hs[:, H1 + EMBEDDING_DIM:]                        # (T, 1)

    # Deep layer 2 (BN folded into weights) + ReLU.
    h2 = jnp.dot(h, w2_ref[...], preferred_element_type=jnp.float32) + b2_ref[...]
    h2 = jnp.maximum(h2, 0.0)                                   # (T, 32)

    # Consolidated epilogue: ONE lane reduction.
    #   logit = (fm_first - 0.5*sum||e_f||^2) + 0.5*||s||^2 + h2.w3 + (b3 + bias)
    r = jnp.concatenate([0.5 * s * s, h2 * w3_ref[...], precomp], axis=1)  # (T, 49)
    logit = jnp.sum(r, axis=1, keepdims=True) + b3_ref[0, 0]    # (T, 1)
    # TODO(synk): output is a lane-sparse (T,1) column; switch to a lane-dense
    #             (n_pad//128, 128) layout if profiles show the masked stores
    #             exposed after tile enlargement.
    out_ref[...] = jax.nn.sigmoid(logit)


# ------------------------------- wrapper --------------------------------------
def _round_up(x, m):
    return (x + m - 1) // m * m


def _choose_tile(n, tile_n):
    """Scale tile with n; keep >= ~8 grid steps for big batches (v7x 2 TCs)."""
    n8 = _round_up(max(n, 1), 8)
    if n8 <= tile_n:
        return n8
    target = _round_up((n8 + 7) // 8, 8)
    return int(max(1024, min(tile_n, target)))


def deepfm_pallas(feats, fused, *, tile_n=4096):
    """feats: (N, 8) f32 raw features, fused: dict of folded params."""
    n = feats.shape[0]
    tile = _choose_tile(n, tile_n)
    n_pad = _round_up(n, tile)
    if n_pad != n:
        feats = jnp.pad(feats, ((0, n_pad - n), (0, 0)))
    grid = (n_pad // tile,)

    tiled = lambda i: (i, 0)      # batch-tiled operands
    resident = lambda i: (0, 0)   # weights: same block every step -> stay in VMEM

    pos = pl.pallas_call(
        deepfm_kernel,
        out_shape=jax.ShapeDtypeStruct((n_pad, 1), jnp.float32),
        grid=grid,
        in_specs=[
            pl.BlockSpec((tile, N_RAW), tiled),                 # raw features
            pl.BlockSpec((X_DIM, OUT_COLS), resident),          # fused weight
            pl.BlockSpec((1, H1), resident),                    # b1'
            pl.BlockSpec((H1, H2), resident),                   # W2'
            pl.BlockSpec((1, H2), resident),                    # b2'
            pl.BlockSpec((1, H2), resident),                    # W3^T
            pl.BlockSpec(memory_space=pltpu.MemorySpace.SMEM),  # b3 + fm bias
        ],
        out_specs=pl.BlockSpec((tile, 1), tiled),
        compiler_params=pltpu.CompilerParams(
            dimension_semantics=("parallel",),                  # megacore on v7x
            vmem_limit_bytes=40 * 1024 * 1024),                 # covers v5e 16MiB default
    )(feats, fused["wf"], fused["b1"], fused["w2"], fused["b2"],
      fused["w3t"], fused["b3"])
    return pos[:n]


# ------------------------------ params / fusion -------------------------------
def init_params(key):
    keys = iter(jax.random.split(key, 64))
    p = {}
    p["first_cat"] = [0.1 * jax.random.normal(next(keys), (s, 1), jnp.float32)
                      for s in CAT_FEATURE_SIZES]
    p["second_cat"] = [0.1 * jax.random.normal(next(keys), (s, EMBEDDING_DIM), jnp.float32)
                       for s in CAT_FEATURE_SIZES]
    p["first_cont"] = [0.1 * jax.random.normal(next(keys), (1, 1), jnp.float32)
                       for _ in range(N_CONT_FEATURES)]
    p["second_cont"] = [0.1 * jax.random.normal(next(keys), (1, EMBEDDING_DIM), jnp.float32)
                        for _ in range(N_CONT_FEATURES)]
    p["bias"] = jax.random.normal(next(keys), (1, 1), jnp.float32)

    def linear(k, fan_in, fan_out):
        lim = 1.0 / np.sqrt(fan_in)
        kw, kb = jax.random.split(k)
        w = jax.random.uniform(kw, (fan_in, fan_out), jnp.float32, -lim, lim)
        b = jax.random.uniform(kb, (1, fan_out), jnp.float32, -lim, lim)
        return w, b

    def bn(width):
        return {
            "g": 1.0 + 0.1 * jax.random.normal(next(keys), (1, width), jnp.float32),
            "be": 0.1 * jax.random.normal(next(keys), (1, width), jnp.float32),
            "m": 0.1 * jax.random.normal(next(keys), (1, width), jnp.float32),
            "v": jax.random.uniform(next(keys), (1, width), jnp.float32, 0.5, 1.5),
        }

    d = {}
    d["w1"], d["b1"] = linear(next(keys), DEEP_IN, H1)
    d["w2"], d["b2"] = linear(next(keys), H1, H2)
    d["w3"], d["b3"] = linear(next(keys), H2, 1)
    bn1, bn2 = bn(H1), bn(H2)
    d["g1"], d["be1"], d["m1"], d["v1"] = bn1["g"], bn1["be"], bn1["m"], bn1["v"]
    d["g2"], d["be2"], d["m2"], d["v2"] = bn2["g"], bn2["be"], bn2["m"], bn2["v"]
    p["dnn"] = d
    return p


def fuse_params(params):
    """Fold eval-mode BN into the Linears; fold embedding tables, FM first-order
    values and -0.5*||e||^2 terms into a single (28, 49) fused weight."""
    d = params["dnn"]
    D = EMBEDDING_DIM
    scale1 = d["g1"] * jax.lax.rsqrt(d["v1"] + BN_EPS)
    w1f = d["w1"] * scale1                                       # (128, 32)
    b1f = (d["b1"] - d["m1"]) * scale1 + d["be1"]
    scale2 = d["g2"] * jax.lax.rsqrt(d["v2"] + BN_EPS)
    w2f = d["w2"] * scale2
    b2f = (d["b2"] - d["m2"]) * scale2 + d["be2"]

    e_rows, pre_col = [], []
    # categorical one-hot rows
    for f in range(N_CAT):
        emb = params["second_cat"][f]                            # (size_f, D)
        size = CAT_FEATURE_SIZES[f]
        row = jnp.zeros((size, DEEP_IN), jnp.float32).at[:, f * D:(f + 1) * D].set(emb)
        e_rows.append(row)
        pre_col.append(params["first_cat"][f][:, 0]
                       - 0.5 * jnp.sum(emb * emb, axis=1))       # (size,)
    # continuous linear rows
    for i in range(N_CONT_FEATURES):
        emb = params["second_cont"][i]                           # (1, D)
        row = jnp.zeros((1, DEEP_IN), jnp.float32)
        row = row.at[:, (N_CAT + i) * D:(N_CAT + i + 1) * D].set(emb)
        e_rows.append(row)
        pre_col.append(params["first_cont"][i][:, 0])            # (1,)
    # continuous squared rows (only feed the precomp column)
    for i in range(N_CONT_FEATURES):
        emb = params["second_cont"][i]
        e_rows.append(jnp.zeros((1, DEEP_IN), jnp.float32))
        pre_col.append(-0.5 * jnp.sum(emb * emb, axis=1))        # (1,)

    E = jnp.concatenate(e_rows, axis=0)                          # (28, 128)
    pre = jnp.concatenate(pre_col, axis=0)[:, None]              # (28, 1)
    w1_block = E @ w1f                                           # (28, 32)
    s_block = E.reshape(X_DIM, N_FIELDS, D).sum(axis=1)          # (28, 16)

    return {
        "wf": jnp.concatenate([w1_block, s_block, pre], axis=1), # (28, 49)
        "b1": b1f, "w2": w2f, "b2": b2f,
        "w3t": d["w3"].T,                                        # (1, H2)
        "b3": d["b3"] + params["bias"],                          # (1, 1)
    }


# ------------------------------ forward / reference ---------------------------
@jax.jit
def deepfm_forward(cat_feats, cont_feats, params):
    feats = jnp.concatenate([cat_feats.astype(jnp.float32), cont_feats], axis=1)
    fused = fuse_params(params)
    pos = deepfm_pallas(feats, fused)
    return jnp.concatenate([1.0 - pos, pos], axis=1)


def _embed(cat_feats, cont_feats, params):
    first = [params["first_cat"][i][cat_feats[:, i]] for i in range(N_CAT)]
    second = [params["second_cat"][i][cat_feats[:, i]] for i in range(N_CAT)]
    first += [params["first_cont"][i] * cont_feats[:, i:i + 1]
              for i in range(N_CONT_FEATURES)]
    second += [params["second_cont"][i] * cont_feats[:, i:i + 1]
               for i in range(N_CONT_FEATURES)]
    first_vals = jnp.concatenate(first, axis=1)                  # (N, F)
    deep = jnp.concatenate(second, axis=1)                       # (N, F*D)
    return first_vals, second, deep


def deepfm_reference(cat_feats, cont_feats, params):
    """Pure-JAX f32 reference (matches the PyTorch module in eval mode)."""
    first_vals, second, deep = _embed(cat_feats, cont_feats, params)
    fm_first = jnp.sum(first_vals, axis=1, keepdims=True)
    emb3d = jnp.stack(second, axis=1)
    s = jnp.sum(emb3d, axis=1)
    sq = jnp.sum(emb3d ** 2, axis=1)
    fm_second = 0.5 * jnp.sum(s * s - sq, axis=1, keepdims=True)
    d = params["dnn"]
    h = deep @ d["w1"] + d["b1"]
    h = (h - d["m1"]) / jnp.sqrt(d["v1"] + BN_EPS) * d["g1"] + d["be1"]
    h = jnp.maximum(h, 0.0)
    h = h @ d["w2"] + d["b2"]
    h = (h - d["m2"]) / jnp.sqrt(d["v2"] + BN_EPS) * d["g2"] + d["be2"]
    h = jnp.maximum(h, 0.0)
    deep_out = h @ d["w3"] + d["b3"]
    pos = jax.nn.sigmoid(params["bias"][0, 0] + fm_first + fm_second + deep_out)
    return jnp.concatenate([1.0 - pos, pos], axis=1)


# ----------------------------------- main ------------------------------------
if __name__ == "__main__":
    key = jax.random.PRNGKey(0)
    k_params, k_cat, k_cont = jax.random.split(key, 3)
    params = init_params(k_params)

    cat_keys = jax.random.split(k_cat, N_CAT)
    cat_feats = jnp.stack(
        [jax.random.randint(cat_keys[i], (BATCH,), 0, CAT_FEATURE_SIZES[i], jnp.int32)
         for i in range(N_CAT)], axis=1)                          # (N, n_cat)
    cont_feats = jax.random.normal(k_cont, (BATCH, N_CONT_FEATURES), jnp.float32)

    out = deepfm_forward(cat_feats, cont_feats, params)
    out = jax.block_until_ready(out)

    ref = deepfm_reference(cat_feats, cont_feats, params)
    np.testing.assert_allclose(np.asarray(out), np.asarray(ref), rtol=2e-2, atol=2e-3)
    assert out.shape == (BATCH, 2)

    print("KERNEL_OK")
</pallas_src>

<mosaic_0001>
module attributes {stable_mosaic.version = 11 : i64} {
  func.func @deepfm_kernel(%arg0: i32, %arg1: memref<8x8xf32, #tpu.memory_space<vmem>>, %arg2: memref<28x49xf32, #tpu.memory_space<vmem>>, %arg3: memref<1x32xf32, #tpu.memory_space<vmem>>, %arg4: memref<32x32xf32, #tpu.memory_space<vmem>>, %arg5: memref<1x32xf32, #tpu.memory_space<vmem>>, %arg6: memref<1x32xf32, #tpu.memory_space<vmem>>, %arg7: memref<1x1xf32, #tpu.memory_space<smem>>, %arg8: memref<8x1xf32, #tpu.memory_space<vmem>>) attributes {dimension_semantics = [#tpu.dimension_semantics<parallel>], iteration_bounds = array<i64: 1>, scalar_prefetch = 0 : i64, scratch_operands = 0 : i64, tpu.core_type = #tpu.core_type<tc>, window_params = [{transform_indices = @transform_0, window_bounds = array<i64: 8, 8>}, {pipeline_mode = #tpu.pipeline_mode<synchronous>, transform_indices = @transform_1, window_bounds = array<i64: 28, 49>}, {pipeline_mode = #tpu.pipeline_mode<synchronous>, transform_indices = @transform_2, window_bounds = array<i64: 1, 32>}, {pipeline_mode = #tpu.pipeline_mode<synchronous>, transform_indices = @transform_3, window_bounds = array<i64: 32, 32>}, {pipeline_mode = #tpu.pipeline_mode<synchronous>, transform_indices = @transform_4, window_bounds = array<i64: 1, 32>}, {pipeline_mode = #tpu.pipeline_mode<synchronous>, transform_indices = @transform_5, window_bounds = array<i64: 1, 32>}, {transform_indices = @transform_6, window_bounds = array<i64: 1, 1>}, {transform_indices = @transform_7, window_bounds = array<i64: 8, 1>}]} {
    %c0 = arith.constant 0 : index
    %c0_0 = arith.constant 0 : index
    %0 = vector.load %arg1[%c0, %c0_0] : memref<8x8xf32, #tpu.memory_space<vmem>>, vector<8x8xf32>
    %1 = vector.extract_strided_slice %0 {offsets = [0, 3], sizes = [8, 5], strides = [1, 1]} : vector<8x8xf32> to vector<8x5xf32>
    %2 = tpu.iota {dimensions = array<i32: 1>} : vector<1x4xi32>
    %3 = arith.sitofp %2 : vector<1x4xi32> to vector<1x4xf32>
    %4 = vector.extract_strided_slice %0 {offsets = [0, 0], sizes = [8, 1], strides = [1, 1]} : vector<8x8xf32> to vector<8x1xf32>
    %5 = vector.broadcast %4 : vector<8x1xf32> to vector<8x4xf32>
    %6 = vector.broadcast %3 : vector<1x4xf32> to vector<8x4xf32>
    %7 = arith.cmpf oeq, %5, %6 : vector<8x4xf32>
    %cst = arith.constant 1.000000e+00 : f32
    %cst_1 = arith.constant 0.000000e+00 : f32
    %8 = vector.broadcast %cst : f32 to vector<8x4xf32>
    %9 = vector.broadcast %cst_1 : f32 to vector<8x4xf32>
    %10 = arith.select %7, %8, %9 : vector<8x4xi1>, vector<8x4xf32>
    %11 = tpu.iota {dimensions = array<i32: 1>} : vector<1x6xi32>
    %12 = arith.sitofp %11 : vector<1x6xi32> to vector<1x6xf32>
    %13 = vector.extract_strided_slice %0 {offsets = [0, 1], sizes = [8, 1], strides = [1, 1]} : vector<8x8xf32> to vector<8x1xf32>
    %14 = vector.broadcast %13 : vector<8x1xf32> to vector<8x6xf32>
    %15 = vector.broadcast %12 : vector<1x6xf32> to vector<8x6xf32>
    %16 = arith.cmpf oeq, %14, %15 : vector<8x6xf32>
    %cst_2 = arith.constant 1.000000e+00 : f32
    %cst_3 = arith.constant 0.000000e+00 : f32
    %17 = vector.broadcast %cst_2 : f32 to vector<8x6xf32>
    %18 = vector.broadcast %cst_3 : f32 to vector<8x6xf32>
    %19 = arith.select %16, %17, %18 : vector<8x6xi1>, vector<8x6xf32>
    %20 = tpu.iota {dimensions = array<i32: 1>} : vector<1x8xi32>
    %21 = arith.sitofp %20 : vector<1x8xi32> to vector<1x8xf32>
    %22 = vector.extract_strided_slice %0 {offsets = [0, 2], sizes = [8, 1], strides = [1, 1]} : vector<8x8xf32> to vector<8x1xf32>
    %23 = vector.broadcast %22 : vector<8x1xf32> to vector<8x8xf32>
    %24 = vector.broadcast %21 : vector<1x8xf32> to vector<8x8xf32>
    %25 = arith.cmpf oeq, %23, %24 : vector<8x8xf32>
    %cst_4 = arith.constant 1.000000e+00 : f32
    %cst_5 = arith.constant 0.000000e+00 : f32
    %26 = vector.broadcast %cst_4 : f32 to vector<8x8xf32>
    %27 = vector.broadcast %cst_5 : f32 to vector<8x8xf32>
    %28 = arith.select %25, %26, %27 : vector<8x8xi1>, vector<8x8xf32>
    %29 = arith.mulf %1, %1 : vector<8x5xf32>
    %30 = tpu.concatenate %10, %19, %28, %1, %29 in 1 : vector<8x4xf32>, vector<8x6xf32>, vector<8x8xf32>, vector<8x5xf32>, vector<8x5xf32> -> vector<8x28xf32>
    %c0_6 = arith.constant 0 : index
    %c0_7 = arith.constant 0 : index
    %31 = vector.load %arg2[%c0_6, %c0_7] : memref<28x49xf32, #tpu.memory_space<vmem>>, vector<28x49xf32>
    %cst_8 = arith.constant dense<0.000000e+00> : vector<8x49xf32>
    %32 = tpu.matmul %30, %31, %cst_8 {dimension_numbers = #tpu.dot_dimension_numbers<[1], [0], [0], [1], [0, 0, 1, 1], [], []>} : vector<8x28xf32>, vector<28x49xf32>, vector<8x49xf32> -> vector<8x49xf32>
    %33 = vector.extract_strided_slice %32 {offsets = [0, 0], sizes = [8, 32], strides = [1, 1]} : vector<8x49xf32> to vector<8x32xf32>
    %c0_9 = arith.constant 0 : index
    %c0_10 = arith.constant 0 : index
    %34 = vector.load %arg3[%c0_9, %c0_10] : memref<1x32xf32, #tpu.memory_space<vmem>>, vector<1x32xf32>
    %35 = vector.broadcast %34 : vector<1x32xf32> to vector<8x32xf32>
    %36 = arith.addf %33, %35 : vector<8x32xf32>
    %cst_11 = arith.constant 0.000000e+00 : f32
    %37 = vector.broadcast %cst_11 : f32 to vector<8x32xf32>
    %38 = arith.maximumf %36, %37 : vector<8x32xf32>
    %39 = vector.extract_strided_slice %32 {offsets = [0, 32], sizes = [8, 16], strides = [1, 1]} : vector<8x49xf32> to vector<8x16xf32>
    %40 = vector.extract_strided_slice %32 {offsets = [0, 48], sizes = [8, 1], strides = [1, 1]} : vector<8x49xf32> to vector<8x1xf32>
    %c0_12 = arith.constant 0 : index
    %c0_13 = arith.constant 0 : index
    %41 = vector.load %arg4[%c0_12, %c0_13] : memref<32x32xf32, #tpu.memory_space<vmem>>, vector<32x32xf32>
    %cst_14 = arith.constant dense<0.000000e+00> : vector<8x32xf32>
    %42 = tpu.matmul %38, %41, %cst_14 {dimension_numbers = #tpu.dot_dimension_numbers<[1], [0], [0], [1], [0, 0, 1, 1], [], []>} : vector<8x32xf32>, vector<32x32xf32>, vector<8x32xf32> -> vector<8x32xf32>
    %c0_15 = arith.constant 0 : index
    %c0_16 = arith.constant 0 : index
    %43 = vector.load %arg5[%c0_15, %c0_16] : memref<1x32xf32, #tpu.memory_space<vmem>>, vector<1x32xf32>
    %44 = vector.broadcast %43 : vector<1x32xf32> to vector<8x32xf32>
    %45 = arith.addf %42, %44 : vector<8x32xf32>
    %cst_17 = arith.constant 0.000000e+00 : f32
    %46 = vector.broadcast %cst_17 : f32 to vector<8x32xf32>
    %47 = arith.maximumf %45, %46 : vector<8x32xf32>
    %cst_18 = arith.constant 5.000000e-01 : f32
    %48 = vector.broadcast %cst_18 : f32 to vector<8x16xf32>
    %49 = arith.mulf %48, %39 : vector<8x16xf32>
    %50 = arith.mulf %49, %39 : vector<8x16xf32>
    %c0_19 = arith.constant 0 : index
    %c0_20 = arith.constant 0 : index
    %51 = vector.load %arg6[%c0_19, %c0_20] : memref<1x32xf32, #tpu.memory_space<vmem>>, vector<1x32xf32>
    %52 = vector.broadcast %51 : vector<1x32xf32> to vector<8x32xf32>
    %53 = arith.mulf %47, %52 : vector<8x32xf32>
    %54 = tpu.concatenate %50, %53, %40 in 1 : vector<8x16xf32>, vector<8x32xf32>, vector<8x1xf32> -> vector<8x49xf32>
    %cst_21 = arith.constant dense<0.000000e+00> : vector<8xf32>
    %55 = vector.multi_reduction <add>, %54, %cst_21 [1] : vector<8x49xf32> to vector<8xf32>
    %56 = vector.shape_cast %55 : vector<8xf32> to vector<8x1xf32>
    %c0_22 = arith.constant 0 : index
    %c0_23 = arith.constant 0 : index
    %57 = memref.load %arg7[%c0_22, %c0_23] : memref<1x1xf32, #tpu.memory_space<smem>>
    %58 = vector.broadcast %57 : f32 to vector<8x1xf32>
    %59 = arith.addf %56, %58 : vector<8x1xf32>
    %60 = arith.negf %59 : vector<8x1xf32>
    %61 = math.exp %60 : vector<8x1xf32>
    %cst_24 = arith.constant 1.000000e+00 : f32
    %62 = vector.broadcast %cst_24 : f32 to vector<8x1xf32>
    %63 = arith.addf %62, %61 : vector<8x1xf32>
    %64 = arith.divf %62, %63 : vector<8x1xf32>
    %c0_25 = arith.constant 0 : index
    %c0_26 = arith.constant 0 : index
    %65 = vector.load %arg8[%c0_25, %c0_26] : memref<8x1xf32, #tpu.memory_space<vmem>>, vector<8x1xf32>
    tpu.vector_store %arg8[%c0_25, %c0_26], %64 {strides = array<i32>} : memref<8x1xf32, #tpu.memory_space<vmem>>, vector<8x1xf32>,
    return
  }
  func.func @transform_0(%arg0: i32) -> (i32, i32) {
    %c0_i32 = arith.constant 0 : i32
    %c0_i32_0 = arith.constant 0 : i32
    return %arg0, %c0_i32 : i32, i32
  }
  func.func @transform_1(%arg0: i32) -> (i32, i32) {
    %c0_i32 = arith.constant 0 : i32
    %c0_i32_0 = arith.constant 0 : i32
    %c0_i32_1 = arith.constant 0 : i32
    return %c0_i32, %c0_i32_0 : i32, i32
  }
  func.func @transform_2(%arg0: i32) -> (i32, i32) {
    %c0_i32 = arith.constant 0 : i32
    %c0_i32_0 = arith.constant 0 : i32
    %c0_i32_1 = arith.constant 0 : i32
    return %c0_i32, %c0_i32_0 : i32, i32
  }
  func.func @transform_3(%arg0: i32) -> (i32, i32) {
    %c0_i32 = arith.constant 0 : i32
    %c0_i32_0 = arith.constant 0 : i32
    %c0_i32_1 = arith.constant 0 : i32
    return %c0_i32, %c0_i32_0 : i32, i32
  }
  func.func @transform_4(%arg0: i32) -> (i32, i32) {
    %c0_i32 = arith.constant 0 : i32
    %c0_i32_0 = arith.constant 0 : i32
    %c0_i32_1 = arith.constant 0 : i32
    return %c0_i32, %c0_i32_0 : i32, i32
  }
  func.func @transform_5(%arg0: i32) -> (i32, i32) {
    %c0_i32 = arith.constant 0 : i32
    %c0_i32_0 = arith.constant 0 : i32
    %c0_i32_1 = arith.constant 0 : i32
    return %c0_i32, %c0_i32_0 : i32, i32
  }
  func.func @transform_6(%arg0: i32) -> (i32, i32) {
    %c0_i32 = arith.constant 0 : i32
    %c0_i32_0 = arith.constant 0 : i32
    %c0_i32_1 = arith.constant 0 : i32
    return %c0_i32, %c0_i32_0 : i32, i32
  }
  func.func @transform_7(%arg0: i32) -> (i32, i32) {
    %c0_i32 = arith.constant 0 : i32
    %c0_i32_0 = arith.constant 0 : i32
    return %arg0, %c0_i32 : i32, i32
  }
}

</mosaic_0001>

<bundles_post_ra>
// kernel: deepfm_forward.1
= control target key start
LH: loop header
LB: loop body
LE: loop exit
PB: predicated region body
PF: predicated region fallthrough
CT: control target
= control target key end

     0   :  { %v349_v0 = vmov 1   ;;  %v350_v2 = vmov 0   ;;  %v351_v3 = vmov 0.0   ;;  %v352_v4 = vmov 2   ;;  %s353_s26 = smov 15   ;;  %s355_s13 = smov 4   ;;  %s455_s0 = inlined_call_operand.vmem [shape: f32[8,8], index: 0, kind: input, shape index: {}]   ;;  %s456_s1 = inlined_call_operand.vmem [shape: f32[28,49], index: 1, kind: input, shape index: {}]   ;;  %s457_s3 = inlined_call_operand.vmem [shape: f32[32,32], index: 3, kind: input, shape index: {}]   ;;  %s458_s2 = inlined_call_operand.vmem [shape: f32[1,32], index: 2, kind: input, shape index: {}]   ;;  %s459_s4 = inlined_call_operand.vmem [shape: f32[1,32], index: 4, kind: input, shape index: {}]   ;;  %s460_s5 = inlined_call_operand.vmem [shape: f32[1,32], index: 5, kind: input, shape index: {}]   ;;  %s461_s6 = inlined_call_operand.<no memory space> [shape: f32[1,1], index: 6, kind: input, shape index: {}]   ;;  %s462_s7 = inlined_call_operand.vmem [shape: f32[8,1], index: 7, kind: output, shape index: {}]  }
   0x1   :  { %342 = vset.pattern.permute.xlu0 %v349_v0  ;;  %v27_v1 = vld [vmem:[%s455_s0] sm:$0xff]  ;;  %344 = vset.pattern.permute.xlu1 %v350_v2  ;;  %v28_v5 = vlaneseq  ;;  %vm82_vm0 = vcmask 1043456   ;;  %v77_v6 = vld [vmem:[%s456_s1 + $0x18] sm:$0xf]  ;;  %v76_v8 = vld [vmem:[%s456_s1 + $0x10] sm:$0xff]  ;;  %vm354_vm1 = vmmov 0   ;;  %v278_v50 = vstv %s461_s6 }
   0x2   :  { %39 = vperm.xlu0 %342, %v27_v1   ;;  %33 = vperm.xlu1 %344, %v27_v1   ;;  %v75_v9 = vld [vmem:[%s456_s1 + $0x8] sm:$0xff]  ;;  %v74_v11 = vld [vmem:[%s456_s1] sm:$0xff]  ;;  %v168_v13 = vld [vmem:[%s457_s3 + $0x18] sm:$0xff]  ;;  %s356_s1 = smov 10   ;;  %v50_v17 = vmul.f32 %v27_v1, %v27_v1  ;;  %s357_s14 = smov 20   ;;  %vm66_vm5 = vcmask 31744  }
   0x3   :  { %309 = vmatprep.subr.mxu0 %v351_v3  ;;  %320 = vmatprep.subr.mxu1 %v351_v3  ;;  %v29_v7 = vand.u32 127, %v28_v5  ;;  %vm68_vm6 = vcmask 80896   ;;  %vm70_vm7 = vcmask 146432   ;;  %vm72_vm8 = vcmask 187392   ;;  %v167_v28 = vld [vmem:[%s457_s3 + $0x10] sm:$0xff]  ;;  %v166_v29 = vld [vmem:[%s457_s3 + $0x8] sm:$0xff] }
   0x4   :  { %310 = vmatpush3.msk.msra.mxu0 %vm82_vm0, %v77_v6  ;;  %317 = vmatprep.mubr.msk.f32.mxu0 %vm354_vm1, %v351_v3  ;;  %vm78_vm9 = vcmask 228352   ;;  %v165_v30 = vld [vmem:[%s457_s3] sm:$0xff]  ;;  %vm176_vm10 = vcmask 261120   ;;  %s358_s23 = smov 96   ;;  %vm269_vm11 = vcmask 130048   ;;  %vm271_vm12 = vcmask 392192  }
   0x5   :  { %311 = vmatprep.subr.mxu0 %v351_v3  ;;  %v30_v10 = vcvt.s32.f32 %v29_v7  ;;  %328 = vmatprep.mubr.msk.f32.mxu1 %vm354_vm1, %v351_v3  ;;  %v294_v31 = vld [vmem:[%s458_s2] ss:$0 sm:$0xff]  ;;  %s359_s2 = smov 16   ;;  %vm273_vm13 = vcmask 400384   ;;  %vm286_vm14 = vcmask 7168  }
   0x6   :  { %343 = vset.pattern.permute.xlu0 %v352_v4  ;;  %312 = vmatpush3.msra.mxu0 %v76_v8  ;;  %v295_v38 = vld [vmem:[%s459_s4] ss:$0 sm:$0xff] }
   0x7   :  { %45 = vperm.xlu0 %343, %v27_v1   ;;  %313 = vmatprep.subr.mxu0 %v351_v3  ;;  %v297_v41 = vld [vmem:[%s460_s5] ss:$0 sm:$0xff] }
   0x8   :  { %314 = vmatpush3.msra.mxu0 %v75_v9  ;;  %321 = vmatpush3.msra.mxu1 %v168_v13 }
   0x9   :  { %315 = vmatprep.subr.mxu0 %v351_v3  ;;  %322 = vmatprep.subr.mxu1 %v351_v3 }
   0xa   :  { %316 = vmatpush3.msra.mxu0 %v74_v11  ;;  %323 = vmatpush3.msra.mxu1 %v167_v28 }
   0xb   :  { %59 = vrot.lane.b32.xlu0 %v27_v1, %s353_s26  ;;  %324 = vmatprep.subr.mxu1 %v351_v3 }
   0xc   :  { %325 = vmatpush3.msra.mxu1 %v166_v29 }
   0xd   :  { %326 = vmatprep.subr.mxu1 %v351_v3 }
   0xe   :  { %327 = vmatpush3.msra.mxu1 %v165_v30 }
  0x7d   :  { %v40_v12 = vpop.permute.xlu0 %39  ;;  %v34_v18 = vpop.permute.xlu1 %33 }
  0x7e   :  { %vm42_vm2 = vcmp.eq.f32.partialorder %v40_v12, %v30_v10  ;;  %vm36_vm4 = vcmp.eq.f32.partialorder %v34_v18, %v30_v10 }
  0x7f   :  { %v43_v14 = vsel %vm42_vm2, 1.0, %v351_v3  ;;  %v37_v20 = vsel %vm36_vm4, 1.0, %v351_v3 }
  0x80   :  { %52 = vrot.lane.b32.xlu1 %v43_v14, %s355_s13 }
  0x82   :  { %v46_v15 = vpop.permute.xlu0 %45 }
  0x83   :  { %vm48_vm3 = vcmp.eq.f32.partialorder %v46_v15, %v30_v10 }
  0x84   :  { %v49_v16 = vsel %vm48_vm3, 1.0, %v351_v3 }
  0x85   :  { %56 = vrot.lane.b32.xlu1 %v49_v16, %s356_s1 }
  0x86   :  { %v60_v24 = vpop.permute.xlu0 %59 }
  0x89   :  { %63 = vrot.lane.b32.xlu1 %v50_v17, %s357_s14 }
  0xf2   :  { %v53_v19 = vpop.permute.xlu1 %52 }
  0xf3   :  { %v67_v21 = vsel %vm66_vm5, %v37_v20, %v53_v19 }
  0xf7   :  { %v57_v22 = vpop.permute.xlu1 %56 }
  0xf8   :  { %v69_v23 = vsel %vm68_vm6, %v67_v21, %v57_v22 }
  0xf9   :  { %v71_v25 = vsel %vm70_vm7, %v69_v23, %v60_v24 }
  0xfb   :  { %v64_v26 = vpop.permute.xlu1 %63 }
  0xfc   :  { %v73_v27 = vsel %vm72_vm8, %v71_v25, %v64_v26 }
  0xfd   :  { %318 = vmatmul.mubr.msk.f32.vlgmr.msra.gmra.mxu0 %vm78_vm9, %v73_v27 }
 0x1bd   :  { %v152_v32 = vpop.f32.mrf.mxu0 }
 0x1be   :  { %v163_v33 = vadd.f32 %v294_v31, %v152_v32  ;;  %v251_v34 = vmul.f32 0.5, %v152_v32 }
 0x1bf   :  { %v319_v35 = vpop.f32.mrf.mxu0 }
 0x1c0   :  { %v164_v36 = vmax.f32 %v163_v33, 0.0  ;;  %v252_v37 = vmul.f32 %v251_v34, %v152_v32 }
 0x1c2   :  { %262 = vrot.lane.b32.xlu0 %v252_v37, %s358_s23  ;;  %329 = vmatmul.mubr.msk.f32.vlgmr.msra.gmra.mxu1 %vm176_vm10, %v164_v36 }
 0x234   :  { %v263_v45 = vpop.permute.xlu0 %262 }
 0x282   :  { %v246_v39 = vpop.f32.mrf.mxu1 }
 0x283   :  { %v247_v40 = vadd.f32 %v295_v38, %v246_v39 }
 0x284   :  { %v330_v42 = vpop.f32.mrf.mxu1 }
 0x285   :  { %v250_v43 = vmax.f32 %v247_v40, 0.0 }
 0x287   :  { %v260_v44 = vmul.f32 %v297_v41, %v250_v43 }
 0x289   :  { %266 = vrot.lane.b32.xlu1 %v260_v44, %s359_s2 }
 0x2fb   :  { %v267_v46 = vpop.permute.xlu1 %266 }
 0x2fc   :  { %v270_v47 = vsel %vm269_vm11, %v263_v45, %v267_v46 }
 0x2fd   :  { %v272_v48 = vsel %vm271_vm12, %v270_v47, %v152_v32 }
 0x2fe   :  { %v274_v49 = vsel %vm273_vm13, %v272_v48, 0.0 }
 0x2ff   :  { %275 = vadd.xlane.f32.xlu0 %v274_v49 }
 0x388   :  { %v276_v51 = vpop.xlane.xlu0 %275 }
 0x389   :  { %v279_v52 = vadd.f32 %v278_v50, %v276_v51 }
 0x38b   :  { %v298_v53 = vmul.f32 -1.442695, %v279_v52 }
 0x38d   :  { %345 = vpow2.f32 %v298_v53 }
 0x39a   :  { %v346_v54 = vpop.eup %345 }
 0x39b   :  { %v283_v55 = vadd.f32 1.0, %v346_v54 }
 0x39d   :  { %347 = vrcp.f32 %v283_v55 }
 0x3aa   :  { %v348_v56 = vpop.eup %347 }
 0x3ab   :  { %287 = vst.msk [vmem:[%s462_s7] sm:$0xff] %vm286_vm14, %v348_v56 }

</bundles_post_ra>
